<compile_context>
chip_gen: v7x
topology: tpu7x:2x2x1
jax: 0.10.0
libtpu: 0.0.40
codegen_flags: <defaults>
</compile_context>

<pallas_src>
import math
from functools import partial

import jax
import jax.numpy as jnp
from jax.experimental import pallas as pl
from jax.experimental.pallas import tpu as pltpu


# ----------------------------------------------------------------------------
# Fused discriminator kernel: one grid step == one of the 6 inputs.
# All refs live in VMEM; blocks are full arrays (tiny model).
# ----------------------------------------------------------------------------
def _disc_kernel(x_ref,
                 w1_ref, b1_ref, g32_ref, be32_ref,
                 w2_ref, b2_ref,
                 w3_ref, b3_ref,
                 g16_ref, be16_ref,
                 ws_ref, bs_ref,
                 wf_ref, bf_ref,
                 wl_ref, bl_ref,
                 os_ref, of_ref, ol_ref):
    eps = 1e-5

    def bn_relu(h, gamma, beta):
        # BatchNorm1d (training-mode batch statistics, biased variance) + ReLU,
        # all in f32.
        mean = jnp.mean(h, axis=0, keepdims=True)
        var = jnp.mean(jnp.square(h - mean), axis=0, keepdims=True)
        hn = (h - mean) * jax.lax.rsqrt(var + eps)
        return jnp.maximum(hn * gamma + beta, 0.0)

    x = x_ref[...]                                              # (B, 64) bf16

    # fc1 -> BN32 -> ReLU
    h = jnp.dot(x, w1_ref[...],
                preferred_element_type=jnp.float32) + b1_ref[...]
    h = bn_relu(h, g32_ref[...], be32_ref[...])                 # (B, 32) f32

    # fc2 -> BN16 -> ReLU
    h = jnp.dot(h.astype(jnp.bfloat16), w2_ref[...],
                preferred_element_type=jnp.float32) + b2_ref[...]
    h = bn_relu(h, g16_ref[...], be16_ref[...])                 # (B, 16) f32

    # fc3 -> BN16 (same affine params) -> ReLU
    h = jnp.dot(h.astype(jnp.bfloat16), w3_ref[...],
                preferred_element_type=jnp.float32) + b3_ref[...]
    h = bn_relu(h, g16_ref[...], be16_ref[...])                 # (B, 16) f32

    hb = h.astype(jnp.bfloat16)

    # Three heads, written straight to the output refs (fused epilogue).
    os_ref[...] = jnp.dot(hb, ws_ref[...],
                          preferred_element_type=jnp.float32) + bs_ref[...]
    of_ref[...] = jnp.dot(hb, wf_ref[...],
                          preferred_element_type=jnp.float32) + bf_ref[...]
    ol_ref[...] = jnp.dot(hb, wl_ref[...],
                          preferred_element_type=jnp.float32) + bl_ref[...]


@jax.jit
def _disc_pallas(params, xs):
    """xs: (6, B, 64) f32 stacked inputs -> (soft, fake, logit) stacked."""
    S, B, F = xs.shape
    x_bf = xs.astype(jnp.bfloat16)   # halve input DMA bytes; MXU-native dtype

    def full2d(arr):
        return pl.BlockSpec(arr.shape, lambda s: (0, 0))

    in_specs = [
        pl.BlockSpec((None, B, F), lambda s: (s, 0, 0)),   # x, squeezed lead
        full2d(params["w1"]), full2d(params["b1"]),
        full2d(params["g32"]), full2d(params["be32"]),
        full2d(params["w2"]), full2d(params["b2"]),
        full2d(params["w3"]), full2d(params["b3"]),
        full2d(params["g16"]), full2d(params["be16"]),
        full2d(params["ws"]), full2d(params["bs"]),
        full2d(params["wf"]), full2d(params["bf"]),
        full2d(params["wl"]), full2d(params["bl"]),
    ]
    out_specs = (
        pl.BlockSpec((None, B, 4), lambda s: (s, 0, 0)),
        pl.BlockSpec((None, B, 5), lambda s: (s, 0, 0)),
        pl.BlockSpec((None, B, 1), lambda s: (s, 0, 0)),
    )
    out_shape = (
        jax.ShapeDtypeStruct((S, B, 4), jnp.float32),
        jax.ShapeDtypeStruct((S, B, 5), jnp.float32),
        jax.ShapeDtypeStruct((S, B, 1), jnp.float32),
    )

    return pl.pallas_call(
        _disc_kernel,
        out_shape=out_shape,
        grid=(S,),
        in_specs=in_specs,
        out_specs=out_specs,
        compiler_params=pltpu.CompilerParams(
            dimension_semantics=("parallel",)),
    )(x_bf,
      params["w1"], params["b1"], params["g32"], params["be32"],
      params["w2"], params["b2"],
      params["w3"], params["b3"],
      params["g16"], params["be16"],
      params["ws"], params["bs"],
      params["wf"], params["bf"],
      params["wl"], params["bl"])


def discriminator_forward(params, *inputs):
    """Mirrors Discriminator.forward: takes 6 (B, 64) tensors, returns the
    18-tuple (6x softmax-head, 6x fake-head, 6x logit-head)."""
    assert len(inputs) == 6
    xs = jnp.stack(inputs, axis=0)                       # (6, B, 64)
    soft, fake, logit = _disc_pallas(params, xs)
    outs = tuple(soft[i] for i in range(6)) \
         + tuple(fake[i] for i in range(6)) \
         + tuple(logit[i] for i in range(6))
    return outs


# ----------------------------------------------------------------------------
# Parameter init (deterministic; PyTorch-style Linear init).
# Weights stored pre-transposed (in, out) and pre-cast to bf16; biases and
# BatchNorm affines stay f32 as (1, C) rows for clean VMEM broadcast.
# ----------------------------------------------------------------------------
def init_params(seed=0):
    key = jax.random.PRNGKey(seed)
    keys = jax.random.split(key, 6)

    def linear_init(k, fin, fout):
        kw, kb = jax.random.split(k)
        bound = 1.0 / math.sqrt(fin)
        w = jax.random.uniform(kw, (fin, fout), jnp.float32, -bound, bound)
        b = jax.random.uniform(kb, (1, fout), jnp.float32, -bound, bound)
        return w, b

    w1, b1 = linear_init(keys[0], 64, 32)
    w2, b2 = linear_init(keys[1], 32, 16)
    w3, b3 = linear_init(keys[2], 16, 16)
    ws, bs = linear_init(keys[3], 16, 4)
    wf, bf = linear_init(keys[4], 16, 5)
    wl, bl = linear_init(keys[5], 16, 1)

    return {
        "w1": w1.astype(jnp.bfloat16), "b1": b1,
        "w2": w2.astype(jnp.bfloat16), "b2": b2,
        "w3": w3.astype(jnp.bfloat16), "b3": b3,
        "ws": ws.astype(jnp.bfloat16), "bs": bs,
        "wf": wf.astype(jnp.bfloat16), "bf": bf,
        "wl": wl.astype(jnp.bfloat16), "bl": bl,
        # BatchNorm1d default affine init: gamma=1, beta=0.
        "g32": jnp.ones((1, 32), jnp.float32),
        "be32": jnp.zeros((1, 32), jnp.float32),
        "g16": jnp.ones((1, 16), jnp.float32),
        "be16": jnp.zeros((1, 16), jnp.float32),
    }


# ----------------------------------------------------------------------------
# Pure-JAX reference (same bf16-operand / f32-accumulation math) for a
# correctness check of the Pallas kernel.
# ----------------------------------------------------------------------------
def reference_forward(params, xs):
    def bn_relu(h, gamma, beta, eps=1e-5):
        mean = jnp.mean(h, axis=0, keepdims=True)
        var = jnp.mean(jnp.square(h - mean), axis=0, keepdims=True)
        return jnp.maximum((h - mean) * jax.lax.rsqrt(var + eps) * gamma + beta,
                           0.0)

    outs_s, outs_f, outs_l = [], [], []
    for s in range(xs.shape[0]):
        x = xs[s].astype(jnp.bfloat16)
        h = jnp.dot(x, params["w1"],
                    preferred_element_type=jnp.float32) + params["b1"]
        h = bn_relu(h, params["g32"], params["be32"])
        h = jnp.dot(h.astype(jnp.bfloat16), params["w2"],
                    preferred_element_type=jnp.float32) + params["b2"]
        h = bn_relu(h, params["g16"], params["be16"])
        h = jnp.dot(h.astype(jnp.bfloat16), params["w3"],
                    preferred_element_type=jnp.float32) + params["b3"]
        h = bn_relu(h, params["g16"], params["be16"])
        hb = h.astype(jnp.bfloat16)
        outs_s.append(jnp.dot(hb, params["ws"],
                              preferred_element_type=jnp.float32) + params["bs"])
        outs_f.append(jnp.dot(hb, params["wf"],
                              preferred_element_type=jnp.float32) + params["bf"])
        outs_l.append(jnp.dot(hb, params["wl"],
                              preferred_element_type=jnp.float32) + params["bl"])
    return jnp.stack(outs_s), jnp.stack(outs_f), jnp.stack(outs_l)


# ----------------------------------------------------------------------------
if __name__ == "__main__":
    B = 8  # per-input batch; the module takes 6 such inputs of feature dim 64

    key = jax.random.PRNGKey(0)
    xkeys = jax.random.split(key, 6)
    inputs = [jax.random.normal(xkeys[i], (B, 64), jnp.float32)
              for i in range(6)]

    params = init_params(seed=0)

    outputs = discriminator_forward(params, *inputs)
    outputs = jax.block_until_ready(outputs)

    # Shape checks: 6 softmax heads (B,4), 6 fake heads (B,5), 6 logits (B,1).
    assert len(outputs) == 18
    for i in range(6):
        assert outputs[i].shape == (B, 4), outputs[i].shape
        assert outputs[6 + i].shape == (B, 5), outputs[6 + i].shape
        assert outputs[12 + i].shape == (B, 1), outputs[12 + i].shape
    assert all(bool(jnp.all(jnp.isfinite(o))) for o in outputs)

    # Numerical check against a pure-JAX reference using identical precision.
    xs = jnp.stack(inputs, axis=0)
    soft_k, fake_k, logit_k = _disc_pallas(params, xs)
    soft_r, fake_r, logit_r = reference_forward(params, xs)
    assert bool(jnp.allclose(soft_k, soft_r, rtol=2e-2, atol=2e-2))
    assert bool(jnp.allclose(fake_k, fake_r, rtol=2e-2, atol=2e-2))
    assert bool(jnp.allclose(logit_k, logit_r, rtol=2e-2, atol=2e-2))

    print("KERNEL_OK")
</pallas_src>

<mosaic_0001>
module attributes {stable_mosaic.version = 11 : i64} {
  func.func @_disc_kernel(%arg0: i32, %arg1: memref<1x8x64xbf16, #tpu.memory_space<vmem>>, %arg2: memref<64x32xbf16, #tpu.memory_space<vmem>>, %arg3: memref<1x32xf32, #tpu.memory_space<vmem>>, %arg4: memref<1x32xf32, #tpu.memory_space<vmem>>, %arg5: memref<1x32xf32, #tpu.memory_space<vmem>>, %arg6: memref<32x16xbf16, #tpu.memory_space<vmem>>, %arg7: memref<1x16xf32, #tpu.memory_space<vmem>>, %arg8: memref<16x16xbf16, #tpu.memory_space<vmem>>, %arg9: memref<1x16xf32, #tpu.memory_space<vmem>>, %arg10: memref<1x16xf32, #tpu.memory_space<vmem>>, %arg11: memref<1x16xf32, #tpu.memory_space<vmem>>, %arg12: memref<16x4xbf16, #tpu.memory_space<vmem>>, %arg13: memref<1x4xf32, #tpu.memory_space<vmem>>, %arg14: memref<16x5xbf16, #tpu.memory_space<vmem>>, %arg15: memref<1x5xf32, #tpu.memory_space<vmem>>, %arg16: memref<16x1xbf16, #tpu.memory_space<vmem>>, %arg17: memref<1x1xf32, #tpu.memory_space<vmem>>, %arg18: memref<1x8x4xf32, #tpu.memory_space<vmem>>, %arg19: memref<1x8x5xf32, #tpu.memory_space<vmem>>, %arg20: memref<1x8x1xf32, #tpu.memory_space<vmem>>) attributes {dimension_semantics = [#tpu.dimension_semantics<parallel>], iteration_bounds = array<i64: 6>, scalar_prefetch = 0 : i64, scratch_operands = 0 : i64, tpu.core_type = #tpu.core_type<tc>, window_params = [{transform_indices = @transform_0, window_bounds = array<i64: 1, 8, 64>}, {pipeline_mode = #tpu.pipeline_mode<synchronous>, transform_indices = @transform_1, window_bounds = array<i64: 64, 32>}, {pipeline_mode = #tpu.pipeline_mode<synchronous>, transform_indices = @transform_2, window_bounds = array<i64: 1, 32>}, {pipeline_mode = #tpu.pipeline_mode<synchronous>, transform_indices = @transform_3, window_bounds = array<i64: 1, 32>}, {pipeline_mode = #tpu.pipeline_mode<synchronous>, transform_indices = @transform_4, window_bounds = array<i64: 1, 32>}, {pipeline_mode = #tpu.pipeline_mode<synchronous>, transform_indices = @transform_5, window_bounds = array<i64: 32, 16>}, {pipeline_mode = #tpu.pipeline_mode<synchronous>, transform_indices = @transform_6, window_bounds = array<i64: 1, 16>}, {pipeline_mode = #tpu.pipeline_mode<synchronous>, transform_indices = @transform_7, window_bounds = array<i64: 16, 16>}, {pipeline_mode = #tpu.pipeline_mode<synchronous>, transform_indices = @transform_8, window_bounds = array<i64: 1, 16>}, {pipeline_mode = #tpu.pipeline_mode<synchronous>, transform_indices = @transform_9, window_bounds = array<i64: 1, 16>}, {pipeline_mode = #tpu.pipeline_mode<synchronous>, transform_indices = @transform_10, window_bounds = array<i64: 1, 16>}, {pipeline_mode = #tpu.pipeline_mode<synchronous>, transform_indices = @transform_11, window_bounds = array<i64: 16, 4>}, {pipeline_mode = #tpu.pipeline_mode<synchronous>, transform_indices = @transform_12, window_bounds = array<i64: 1, 4>}, {pipeline_mode = #tpu.pipeline_mode<synchronous>, transform_indices = @transform_13, window_bounds = array<i64: 16, 5>}, {pipeline_mode = #tpu.pipeline_mode<synchronous>, transform_indices = @transform_14, window_bounds = array<i64: 1, 5>}, {pipeline_mode = #tpu.pipeline_mode<synchronous>, transform_indices = @transform_15, window_bounds = array<i64: 16, 1>}, {pipeline_mode = #tpu.pipeline_mode<synchronous>, transform_indices = @transform_16, window_bounds = array<i64: 1, 1>}, {transform_indices = @transform_17, window_bounds = array<i64: 1, 8, 4>}, {transform_indices = @transform_18, window_bounds = array<i64: 1, 8, 5>}, {transform_indices = @transform_19, window_bounds = array<i64: 1, 8, 1>}]} {
    %c0 = arith.constant 0 : index
    %c0_0 = arith.constant 0 : index
    %c0_1 = arith.constant 0 : index
    %0 = vector.load %arg1[%c0, %c0_0, %c0_1] : memref<1x8x64xbf16, #tpu.memory_space<vmem>>, vector<1x8x64xbf16>
    %1 = vector.shape_cast %0 : vector<1x8x64xbf16> to vector<8x64xbf16>
    %c0_2 = arith.constant 0 : index
    %c0_3 = arith.constant 0 : index
    %2 = vector.load %arg2[%c0_2, %c0_3] : memref<64x32xbf16, #tpu.memory_space<vmem>>, vector<64x32xbf16>
    %cst = arith.constant dense<0.000000e+00> : vector<8x32xf32>
    %3 = tpu.matmul %1, %2, %cst {dimension_numbers = #tpu.dot_dimension_numbers<[1], [0], [0], [1], [0, 0, 1, 1], [], []>} : vector<8x64xbf16>, vector<64x32xbf16>, vector<8x32xf32> -> vector<8x32xf32>
    %c0_4 = arith.constant 0 : index
    %c0_5 = arith.constant 0 : index
    %4 = vector.load %arg3[%c0_4, %c0_5] : memref<1x32xf32, #tpu.memory_space<vmem>>, vector<1x32xf32>
    %5 = vector.broadcast %4 : vector<1x32xf32> to vector<8x32xf32>
    %6 = arith.addf %3, %5 : vector<8x32xf32>
    %c0_6 = arith.constant 0 : index
    %c0_7 = arith.constant 0 : index
    %7 = vector.load %arg4[%c0_6, %c0_7] : memref<1x32xf32, #tpu.memory_space<vmem>>, vector<1x32xf32>
    %c0_8 = arith.constant 0 : index
    %c0_9 = arith.constant 0 : index
    %8 = vector.load %arg5[%c0_8, %c0_9] : memref<1x32xf32, #tpu.memory_space<vmem>>, vector<1x32xf32>
    %cst_10 = arith.constant dense<0.000000e+00> : vector<32xf32>
    %9 = vector.multi_reduction <add>, %6, %cst_10 [0] : vector<8x32xf32> to vector<32xf32>
    %10 = vector.shape_cast %9 : vector<32xf32> to vector<1x32xf32>
    %cst_11 = arith.constant 8.000000e+00 : f32
    %11 = vector.broadcast %cst_11 : f32 to vector<1x32xf32>
    %12 = arith.divf %10, %11 : vector<1x32xf32>
    %13 = vector.broadcast %12 : vector<1x32xf32> to vector<8x32xf32>
    %14 = arith.subf %6, %13 : vector<8x32xf32>
    %15 = arith.mulf %14, %14 : vector<8x32xf32>
    %cst_12 = arith.constant dense<0.000000e+00> : vector<32xf32>
    %16 = vector.multi_reduction <add>, %15, %cst_12 [0] : vector<8x32xf32> to vector<32xf32>
    %17 = vector.shape_cast %16 : vector<32xf32> to vector<1x32xf32>
    %cst_13 = arith.constant 8.000000e+00 : f32
    %18 = vector.broadcast %cst_13 : f32 to vector<1x32xf32>
    %19 = arith.divf %17, %18 : vector<1x32xf32>
    %20 = vector.broadcast %12 : vector<1x32xf32> to vector<8x32xf32>
    %21 = arith.subf %6, %20 : vector<8x32xf32>
    %cst_14 = arith.constant 9.99999974E-6 : f32
    %22 = vector.broadcast %cst_14 : f32 to vector<1x32xf32>
    %23 = arith.addf %19, %22 : vector<1x32xf32>
    %24 = math.rsqrt %23 : vector<1x32xf32>
    %25 = vector.broadcast %24 : vector<1x32xf32> to vector<8x32xf32>
    %26 = arith.mulf %21, %25 : vector<8x32xf32>
    %27 = vector.broadcast %7 : vector<1x32xf32> to vector<8x32xf32>
    %28 = arith.mulf %26, %27 : vector<8x32xf32>
    %29 = vector.broadcast %8 : vector<1x32xf32> to vector<8x32xf32>
    %30 = arith.addf %28, %29 : vector<8x32xf32>
    %cst_15 = arith.constant 0.000000e+00 : f32
    %31 = vector.broadcast %cst_15 : f32 to vector<8x32xf32>
    %32 = arith.maximumf %30, %31 : vector<8x32xf32>
    %33 = arith.truncf %32 : vector<8x32xf32> to vector<8x32xbf16>
    %c0_16 = arith.constant 0 : index
    %c0_17 = arith.constant 0 : index
    %34 = vector.load %arg6[%c0_16, %c0_17] : memref<32x16xbf16, #tpu.memory_space<vmem>>, vector<32x16xbf16>
    %cst_18 = arith.constant dense<0.000000e+00> : vector<8x16xf32>
    %35 = tpu.matmul %33, %34, %cst_18 {dimension_numbers = #tpu.dot_dimension_numbers<[1], [0], [0], [1], [0, 0, 1, 1], [], []>} : vector<8x32xbf16>, vector<32x16xbf16>, vector<8x16xf32> -> vector<8x16xf32>
    %c0_19 = arith.constant 0 : index
    %c0_20 = arith.constant 0 : index
    %36 = vector.load %arg7[%c0_19, %c0_20] : memref<1x16xf32, #tpu.memory_space<vmem>>, vector<1x16xf32>
    %37 = vector.broadcast %36 : vector<1x16xf32> to vector<8x16xf32>
    %38 = arith.addf %35, %37 : vector<8x16xf32>
    %c0_21 = arith.constant 0 : index
    %c0_22 = arith.constant 0 : index
    %39 = vector.load %arg10[%c0_21, %c0_22] : memref<1x16xf32, #tpu.memory_space<vmem>>, vector<1x16xf32>
    %c0_23 = arith.constant 0 : index
    %c0_24 = arith.constant 0 : index
    %40 = vector.load %arg11[%c0_23, %c0_24] : memref<1x16xf32, #tpu.memory_space<vmem>>, vector<1x16xf32>
    %cst_25 = arith.constant dense<0.000000e+00> : vector<16xf32>
    %41 = vector.multi_reduction <add>, %38, %cst_25 [0] : vector<8x16xf32> to vector<16xf32>
    %42 = vector.shape_cast %41 : vector<16xf32> to vector<1x16xf32>
    %cst_26 = arith.constant 8.000000e+00 : f32
    %43 = vector.broadcast %cst_26 : f32 to vector<1x16xf32>
    %44 = arith.divf %42, %43 : vector<1x16xf32>
    %45 = vector.broadcast %44 : vector<1x16xf32> to vector<8x16xf32>
    %46 = arith.subf %38, %45 : vector<8x16xf32>
    %47 = arith.mulf %46, %46 : vector<8x16xf32>
    %cst_27 = arith.constant dense<0.000000e+00> : vector<16xf32>
    %48 = vector.multi_reduction <add>, %47, %cst_27 [0] : vector<8x16xf32> to vector<16xf32>
    %49 = vector.shape_cast %48 : vector<16xf32> to vector<1x16xf32>
    %cst_28 = arith.constant 8.000000e+00 : f32
    %50 = vector.broadcast %cst_28 : f32 to vector<1x16xf32>
    %51 = arith.divf %49, %50 : vector<1x16xf32>
    %52 = vector.broadcast %44 : vector<1x16xf32> to vector<8x16xf32>
    %53 = arith.subf %38, %52 : vector<8x16xf32>
    %cst_29 = arith.constant 9.99999974E-6 : f32
    %54 = vector.broadcast %cst_29 : f32 to vector<1x16xf32>
    %55 = arith.addf %51, %54 : vector<1x16xf32>
    %56 = math.rsqrt %55 : vector<1x16xf32>
    %57 = vector.broadcast %56 : vector<1x16xf32> to vector<8x16xf32>
    %58 = arith.mulf %53, %57 : vector<8x16xf32>
    %59 = vector.broadcast %39 : vector<1x16xf32> to vector<8x16xf32>
    %60 = arith.mulf %58, %59 : vector<8x16xf32>
    %61 = vector.broadcast %40 : vector<1x16xf32> to vector<8x16xf32>
    %62 = arith.addf %60, %61 : vector<8x16xf32>
    %cst_30 = arith.constant 0.000000e+00 : f32
    %63 = vector.broadcast %cst_30 : f32 to vector<8x16xf32>
    %64 = arith.maximumf %62, %63 : vector<8x16xf32>
    %65 = arith.truncf %64 : vector<8x16xf32> to vector<8x16xbf16>
    %c0_31 = arith.constant 0 : index
    %c0_32 = arith.constant 0 : index
    %66 = vector.load %arg8[%c0_31, %c0_32] : memref<16x16xbf16, #tpu.memory_space<vmem>>, vector<16x16xbf16>
    %cst_33 = arith.constant dense<0.000000e+00> : vector<8x16xf32>
    %67 = tpu.matmul %65, %66, %cst_33 {dimension_numbers = #tpu.dot_dimension_numbers<[1], [0], [0], [1], [0, 0, 1, 1], [], []>} : vector<8x16xbf16>, vector<16x16xbf16>, vector<8x16xf32> -> vector<8x16xf32>
    %c0_34 = arith.constant 0 : index
    %c0_35 = arith.constant 0 : index
    %68 = vector.load %arg9[%c0_34, %c0_35] : memref<1x16xf32, #tpu.memory_space<vmem>>, vector<1x16xf32>
    %69 = vector.broadcast %68 : vector<1x16xf32> to vector<8x16xf32>
    %70 = arith.addf %67, %69 : vector<8x16xf32>
    %c0_36 = arith.constant 0 : index
    %c0_37 = arith.constant 0 : index
    %71 = vector.load %arg10[%c0_36, %c0_37] : memref<1x16xf32, #tpu.memory_space<vmem>>, vector<1x16xf32>
    %c0_38 = arith.constant 0 : index
    %c0_39 = arith.constant 0 : index
    %72 = vector.load %arg11[%c0_38, %c0_39] : memref<1x16xf32, #tpu.memory_space<vmem>>, vector<1x16xf32>
    %cst_40 = arith.constant dense<0.000000e+00> : vector<16xf32>
    %73 = vector.multi_reduction <add>, %70, %cst_40 [0] : vector<8x16xf32> to vector<16xf32>
    %74 = vector.shape_cast %73 : vector<16xf32> to vector<1x16xf32>
    %cst_41 = arith.constant 8.000000e+00 : f32
    %75 = vector.broadcast %cst_41 : f32 to vector<1x16xf32>
    %76 = arith.divf %74, %75 : vector<1x16xf32>
    %77 = vector.broadcast %76 : vector<1x16xf32> to vector<8x16xf32>
    %78 = arith.subf %70, %77 : vector<8x16xf32>
    %79 = arith.mulf %78, %78 : vector<8x16xf32>
    %cst_42 = arith.constant dense<0.000000e+00> : vector<16xf32>
    %80 = vector.multi_reduction <add>, %79, %cst_42 [0] : vector<8x16xf32> to vector<16xf32>
    %81 = vector.shape_cast %80 : vector<16xf32> to vector<1x16xf32>
    %cst_43 = arith.constant 8.000000e+00 : f32
    %82 = vector.broadcast %cst_43 : f32 to vector<1x16xf32>
    %83 = arith.divf %81, %82 : vector<1x16xf32>
    %84 = vector.broadcast %76 : vector<1x16xf32> to vector<8x16xf32>
    %85 = arith.subf %70, %84 : vector<8x16xf32>
    %cst_44 = arith.constant 9.99999974E-6 : f32
    %86 = vector.broadcast %cst_44 : f32 to vector<1x16xf32>
    %87 = arith.addf %83, %86 : vector<1x16xf32>
    %88 = math.rsqrt %87 : vector<1x16xf32>
    %89 = vector.broadcast %88 : vector<1x16xf32> to vector<8x16xf32>
    %90 = arith.mulf %85, %89 : vector<8x16xf32>
    %91 = vector.broadcast %71 : vector<1x16xf32> to vector<8x16xf32>
    %92 = arith.mulf %90, %91 : vector<8x16xf32>
    %93 = vector.broadcast %72 : vector<1x16xf32> to vector<8x16xf32>
    %94 = arith.addf %92, %93 : vector<8x16xf32>
    %cst_45 = arith.constant 0.000000e+00 : f32
    %95 = vector.broadcast %cst_45 : f32 to vector<8x16xf32>
    %96 = arith.maximumf %94, %95 : vector<8x16xf32>
    %97 = arith.truncf %96 : vector<8x16xf32> to vector<8x16xbf16>
    %c0_46 = arith.constant 0 : index
    %c0_47 = arith.constant 0 : index
    %98 = vector.load %arg12[%c0_46, %c0_47] : memref<16x4xbf16, #tpu.memory_space<vmem>>, vector<16x4xbf16>
    %cst_48 = arith.constant dense<0.000000e+00> : vector<8x4xf32>
    %99 = tpu.matmul %97, %98, %cst_48 {dimension_numbers = #tpu.dot_dimension_numbers<[1], [0], [0], [1], [0, 0, 1, 1], [], []>} : vector<8x16xbf16>, vector<16x4xbf16>, vector<8x4xf32> -> vector<8x4xf32>
    %c0_49 = arith.constant 0 : index
    %c0_50 = arith.constant 0 : index
    %100 = vector.load %arg13[%c0_49, %c0_50] : memref<1x4xf32, #tpu.memory_space<vmem>>, vector<1x4xf32>
    %101 = vector.broadcast %100 : vector<1x4xf32> to vector<8x4xf32>
    %102 = arith.addf %99, %101 : vector<8x4xf32>
    %c0_51 = arith.constant 0 : index
    %c0_52 = arith.constant 0 : index
    %c0_53 = arith.constant 0 : index
    %103 = vector.load %arg18[%c0_51, %c0_52, %c0_53] : memref<1x8x4xf32, #tpu.memory_space<vmem>>, vector<1x8x4xf32>
    %104 = vector.shape_cast %103 : vector<1x8x4xf32> to vector<8x4xf32>
    %105 = vector.shape_cast %102 : vector<8x4xf32> to vector<1x8x4xf32>
    tpu.vector_store %arg18[%c0_51, %c0_52, %c0_53], %105 {strides = array<i32>} : memref<1x8x4xf32, #tpu.memory_space<vmem>>, vector<1x8x4xf32>,
    %c0_54 = arith.constant 0 : index
    %c0_55 = arith.constant 0 : index
    %106 = vector.load %arg14[%c0_54, %c0_55] : memref<16x5xbf16, #tpu.memory_space<vmem>>, vector<16x5xbf16>
    %cst_56 = arith.constant dense<0.000000e+00> : vector<8x5xf32>
    %107 = tpu.matmul %97, %106, %cst_56 {dimension_numbers = #tpu.dot_dimension_numbers<[1], [0], [0], [1], [0, 0, 1, 1], [], []>} : vector<8x16xbf16>, vector<16x5xbf16>, vector<8x5xf32> -> vector<8x5xf32>
    %c0_57 = arith.constant 0 : index
    %c0_58 = arith.constant 0 : index
    %108 = vector.load %arg15[%c0_57, %c0_58] : memref<1x5xf32, #tpu.memory_space<vmem>>, vector<1x5xf32>
    %109 = vector.broadcast %108 : vector<1x5xf32> to vector<8x5xf32>
    %110 = arith.addf %107, %109 : vector<8x5xf32>
    %c0_59 = arith.constant 0 : index
    %c0_60 = arith.constant 0 : index
    %c0_61 = arith.constant 0 : index
    %111 = vector.load %arg19[%c0_59, %c0_60, %c0_61] : memref<1x8x5xf32, #tpu.memory_space<vmem>>, vector<1x8x5xf32>
    %112 = vector.shape_cast %111 : vector<1x8x5xf32> to vector<8x5xf32>
    %113 = vector.shape_cast %110 : vector<8x5xf32> to vector<1x8x5xf32>
    tpu.vector_store %arg19[%c0_59, %c0_60, %c0_61], %113 {strides = array<i32>} : memref<1x8x5xf32, #tpu.memory_space<vmem>>, vector<1x8x5xf32>,
    %c0_62 = arith.constant 0 : index
    %c0_63 = arith.constant 0 : index
    %114 = vector.load %arg16[%c0_62, %c0_63] : memref<16x1xbf16, #tpu.memory_space<vmem>>, vector<16x1xbf16>
    %cst_64 = arith.constant dense<0.000000e+00> : vector<8x1xf32>
    %115 = tpu.matmul %97, %114, %cst_64 {dimension_numbers = #tpu.dot_dimension_numbers<[1], [0], [0], [1], [0, 0, 1, 1], [], []>} : vector<8x16xbf16>, vector<16x1xbf16>, vector<8x1xf32> -> vector<8x1xf32>
    %c0_65 = arith.constant 0 : index
    %c0_66 = arith.constant 0 : index
    %116 = vector.load %arg17[%c0_65, %c0_66] : memref<1x1xf32, #tpu.memory_space<vmem>>, vector<1x1xf32>
    %117 = vector.broadcast %116 : vector<1x1xf32> to vector<8x1xf32>
    %118 = arith.addf %115, %117 : vector<8x1xf32>
    %c0_67 = arith.constant 0 : index
    %c0_68 = arith.constant 0 : index
    %c0_69 = arith.constant 0 : index
    %119 = vector.load %arg20[%c0_67, %c0_68, %c0_69] : memref<1x8x1xf32, #tpu.memory_space<vmem>>, vector<1x8x1xf32>
    %120 = vector.shape_cast %119 : vector<1x8x1xf32> to vector<8x1xf32>
    %121 = vector.shape_cast %118 : vector<8x1xf32> to vector<1x8x1xf32>
    tpu.vector_store %arg20[%c0_67, %c0_68, %c0_69], %121 {strides = array<i32>} : memref<1x8x1xf32, #tpu.memory_space<vmem>>, vector<1x8x1xf32>,
    return
  }
  func.func @transform_0(%arg0: i32) -> (i32, i32, i32) {
    %c0_i32 = arith.constant 0 : i32
    %c0_i32_0 = arith.constant 0 : i32
    %c0_i32_1 = arith.constant 0 : i32
    return %arg0, %c0_i32, %c0_i32_0 : i32, i32, i32
  }
  func.func @transform_1(%arg0: i32) -> (i32, i32) {
    %c0_i32 = arith.constant 0 : i32
    %c0_i32_0 = arith.constant 0 : i32
    %c0_i32_1 = arith.constant 0 : i32
    return %c0_i32, %c0_i32_0 : i32, i32
  }
  func.func @transform_2(%arg0: i32) -> (i32, i32) {
    %c0_i32 = arith.constant 0 : i32
    %c0_i32_0 = arith.constant 0 : i32
    %c0_i32_1 = arith.constant 0 : i32
    return %c0_i32, %c0_i32_0 : i32, i32
  }
  func.func @transform_3(%arg0: i32) -> (i32, i32) {
    %c0_i32 = arith.constant 0 : i32
    %c0_i32_0 = arith.constant 0 : i32
    %c0_i32_1 = arith.constant 0 : i32
    return %c0_i32, %c0_i32_0 : i32, i32
  }
  func.func @transform_4(%arg0: i32) -> (i32, i32) {
    %c0_i32 = arith.constant 0 : i32
    %c0_i32_0 = arith.constant 0 : i32
    %c0_i32_1 = arith.constant 0 : i32
    return %c0_i32, %c0_i32_0 : i32, i32
  }
  func.func @transform_5(%arg0: i32) -> (i32, i32) {
    %c0_i32 = arith.constant 0 : i32
    %c0_i32_0 = arith.constant 0 : i32
    %c0_i32_1 = arith.constant 0 : i32
    return %c0_i32, %c0_i32_0 : i32, i32
  }
  func.func @transform_6(%arg0: i32) -> (i32, i32) {
    %c0_i32 = arith.constant 0 : i32
    %c0_i32_0 = arith.constant 0 : i32
    %c0_i32_1 = arith.constant 0 : i32
    return %c0_i32, %c0_i32_0 : i32, i32
  }
  func.func @transform_7(%arg0: i32) -> (i32, i32) {
    %c0_i32 = arith.constant 0 : i32
    %c0_i32_0 = arith.constant 0 : i32
    %c0_i32_1 = arith.constant 0 : i32
    return %c0_i32, %c0_i32_0 : i32, i32
  }
  func.func @transform_8(%arg0: i32) -> (i32, i32) {
    %c0_i32 = arith.constant 0 : i32
    %c0_i32_0 = arith.constant 0 : i32
    %c0_i32_1 = arith.constant 0 : i32
    return %c0_i32, %c0_i32_0 : i32, i32
  }
  func.func @transform_9(%arg0: i32) -> (i32, i32) {
    %c0_i32 = arith.constant 0 : i32
    %c0_i32_0 = arith.constant 0 : i32
    %c0_i32_1 = arith.constant 0 : i32
    return %c0_i32, %c0_i32_0 : i32, i32
  }
  func.func @transform_10(%arg0: i32) -> (i32, i32) {
    %c0_i32 = arith.constant 0 : i32
    %c0_i32_0 = arith.constant 0 : i32
    %c0_i32_1 = arith.constant 0 : i32
    return %c0_i32, %c0_i32_0 : i32, i32
  }
  func.func @transform_11(%arg0: i32) -> (i32, i32) {
    %c0_i32 = arith.constant 0 : i32
    %c0_i32_0 = arith.constant 0 : i32
    %c0_i32_1 = arith.constant 0 : i32
    return %c0_i32, %c0_i32_0 : i32, i32
  }
  func.func @transform_12(%arg0: i32) -> (i32, i32) {
    %c0_i32 = arith.constant 0 : i32
    %c0_i32_0 = arith.constant 0 : i32
    %c0_i32_1 = arith.constant 0 : i32
    return %c0_i32, %c0_i32_0 : i32, i32
  }
  func.func @transform_13(%arg0: i32) -> (i32, i32) {
    %c0_i32 = arith.constant 0 : i32
    %c0_i32_0 = arith.constant 0 : i32
    %c0_i32_1 = arith.constant 0 : i32
    return %c0_i32, %c0_i32_0 : i32, i32
  }
  func.func @transform_14(%arg0: i32) -> (i32, i32) {
    %c0_i32 = arith.constant 0 : i32
    %c0_i32_0 = arith.constant 0 : i32
    %c0_i32_1 = arith.constant 0 : i32
    return %c0_i32, %c0_i32_0 : i32, i32
  }
  func.func @transform_15(%arg0: i32) -> (i32, i32) {
    %c0_i32 = arith.constant 0 : i32
    %c0_i32_0 = arith.constant 0 : i32
    %c0_i32_1 = arith.constant 0 : i32
    return %c0_i32, %c0_i32_0 : i32, i32
  }
  func.func @transform_16(%arg0: i32) -> (i32, i32) {
    %c0_i32 = arith.constant 0 : i32
    %c0_i32_0 = arith.constant 0 : i32
    %c0_i32_1 = arith.constant 0 : i32
    return %c0_i32, %c0_i32_0 : i32, i32
  }
  func.func @transform_17(%arg0: i32) -> (i32, i32, i32) {
    %c0_i32 = arith.constant 0 : i32
    %c0_i32_0 = arith.constant 0 : i32
    %c0_i32_1 = arith.constant 0 : i32
    return %arg0, %c0_i32, %c0_i32_0 : i32, i32, i32
  }
  func.func @transform_18(%arg0: i32) -> (i32, i32, i32) {
    %c0_i32 = arith.constant 0 : i32
    %c0_i32_0 = arith.constant 0 : i32
    %c0_i32_1 = arith.constant 0 : i32
    return %arg0, %c0_i32, %c0_i32_0 : i32, i32, i32
  }
  func.func @transform_19(%arg0: i32) -> (i32, i32, i32) {
    %c0_i32 = arith.constant 0 : i32
    %c0_i32_0 = arith.constant 0 : i32
    %c0_i32_1 = arith.constant 0 : i32
    return %arg0, %c0_i32, %c0_i32_0 : i32, i32, i32
  }
}

</mosaic_0001>

<bundles_post_ra>
// kernel: _disc_pallas.1
= control target key start
LH: loop header
LB: loop body
LE: loop exit
PB: predicated region body
PF: predicated region fallthrough
CT: control target
= control target key end

     0   :  { %s1461_s20 = smov 0   ;;  %s1578_s0 = inlined_call_operand.vmem [shape: bf16[6,8,64], index: 0, kind: input, shape index: {}]   ;;  %s1579_s1 = inlined_call_operand.vmem [shape: bf16[64,32], index: 1, kind: input, shape index: {}]   ;;  %s1580_s2 = inlined_call_operand.vmem [shape: f32[1,32], index: 2, kind: input, shape index: {}]   ;;  %s1581_s3 = inlined_call_operand.vmem [shape: f32[1,32], index: 3, kind: input, shape index: {}]   ;;  %s1582_s4 = inlined_call_operand.vmem [shape: f32[1,32], index: 4, kind: input, shape index: {}]   ;;  %s1583_s5 = inlined_call_operand.vmem [shape: bf16[32,16], index: 5, kind: input, shape index: {}]   ;;  %s1584_s6 = inlined_call_operand.vmem [shape: f32[1,16], index: 6, kind: input, shape index: {}]   ;;  %s1585_s7 = inlined_call_operand.vmem [shape: bf16[16,16], index: 7, kind: input, shape index: {}]   ;;  %s1586_s8 = inlined_call_operand.vmem [shape: f32[1,16], index: 8, kind: input, shape index: {}]   ;;  %s1587_s9 = inlined_call_operand.vmem [shape: f32[1,16], index: 9, kind: input, shape index: {}]   ;;  %s1588_s10 = inlined_call_operand.vmem [shape: f32[1,16], index: 10, kind: input, shape index: {}]   ;;  %s1589_s11 = inlined_call_operand.vmem [shape: bf16[16,4], index: 11, kind: input, shape index: {}]   ;;  %s1590_s12 = inlined_call_operand.vmem [shape: f32[1,4], index: 12, kind: input, shape index: {}]   ;;  %s1591_s13 = inlined_call_operand.vmem [shape: bf16[16,5], index: 13, kind: input, shape index: {}]   ;;  %s1592_s14 = inlined_call_operand.vmem [shape: f32[1,5], index: 14, kind: input, shape index: {}]   ;;  %s1593_s15 = inlined_call_operand.vmem [shape: bf16[16,1], index: 15, kind: input, shape index: {}]   ;;  %s1594_s16 = inlined_call_operand.<no memory space> [shape: f32[1,1], index: 16, kind: input, shape index: {}]   ;;  %s1595_s17 = inlined_call_operand.vmem [shape: f32[6,8,4], index: 17, kind: output, shape index: {0}]   ;;  %s1596_s18 = inlined_call_operand.vmem [shape: f32[6,8,5], index: 18, kind: output, shape index: {1}]   ;;  %s1597_s19 = inlined_call_operand.vmem [shape: f32[6,8,1], index: 19, kind: output, shape index: {2}]  }
   0x1   :  { %1599 = sst [smem:[#allocation3_spill]] %s1578_s0  ;;  %v25_v0 = vstv %s1594_s16 }
   0x2   :  { %1600 = sst [smem:[#allocation4_spill]] %s1579_s1  ;;  %26 = vst [vmem:[#allocation2] sm:$0x1] %v25_v0 }
   0x3   :  { %1601 = sst [smem:[#allocation5_spill]] %s1580_s2 }
   0x4   :  { %1602 = sst [smem:[#allocation6_spill]] %s1581_s3 }
   0x5 LB: > { %s1225_s21 = sadd.s32 4294967295, %s1354_s20   ;;  %p1229_p0 = scmp.ge.s32.totalorder %s1354_s20, 1  ;;  %s1354_s20 = sphi %s1461_s20, %s32_s20  }
   0x6   : > { %p543_p1 = scmp.lt.s32.totalorder %s1354_s20, 7 }
   0x8   : > { %p544_p2 = pnand %p1229_p0, %p543_p1 }
   0x9   : > { %s1603_s2 = sld [smem:[#allocation4_spill]] (!%p544_p2)  ;;  %v1356_v2 = vmov (!%p544_p2), 0.0   ;;  %vm1357_vm0 = vmmov (!%p544_p2), 0   ;;  %p605_p3 = scmp.lt.s32.totalorder (!%p544_p2), %s1225_s21, 5  ;;  %vm662_vm1 = vcmask (!%p544_p2), 523264   ;;  %v1336_v7 = vld [vmem:[%s1583_s5] sm:$0xff] (!%p544_p2)  }
   0xa   : > { %547 = sbr.rel (%p544_p2) target bundleno = 1067 (0x42b), region = 88  ;;  %1278 = vmatprep.subr.bf16.mxu0 (!%p544_p2), %v1356_v2  ;;  %1290 = vmatprep.subr.bf16.mxu1 (!%p544_p2), %v1356_v2  ;;  %s1604_s0 = sld [smem:[#allocation3_spill]] (!%p544_p2)  ;;  %v1337_v8 = vld [vmem:[%s1583_s5 + $0x8] sm:$0xff] (!%p544_p2)   ;;  %vm708_vm2 = vcmask (!%p544_p2), 261120   ;;  %v1241_v37 = vld [vmem:[%s1582_s4] ss:$0 sm:$0xff] (!%p544_p2) }
   0xb   : > { %1286 = vmatprep.mubr.msk.bf16.mxu0 (!%p544_p2), %vm1357_vm0, %v1356_v2  ;;  %1294 = vmatprep.mubr.msk.bf16.mxu1 (!%p544_p2), %vm1357_vm0, %v1356_v2  ;;  %s1606_s28 = sld [smem:[#allocation6_spill]] (!%p544_p2)  ;;  %v1338_v42 = vld [vmem:[%s1585_s7] sm:$0xff] (!%p544_p2)   ;;  %vm815_vm3 = vcmask (!%p544_p2), 130048   ;;  %vm994_vm4 = vcmask (!%p544_p2), 31744   ;;  %vm1051_vm5 = vcmask (!%p544_p2), 39936   ;;  %vm1108_vm6 = vcmask (!%p544_p2), 7168  }
   0xc   : > { %1291 = vmatpush3.bf16.msra.mxu1 (!%p544_p2), %v1336_v7  ;;  %v1242_v43 = vld [vmem:[%s1584_s6] ss:$0 sm:$0xff] (!%p544_p2) }
   0xd   : > { %1292 = vmatprep.subr.bf16.mxu1 (!%p544_p2), %v1356_v2 }
   0xf   : > { %v1332_v1 = vld [vmem:[%s1603_s2] sm:$0xff] (!%p544_p2)   ;;  %v1333_v3 = vld [vmem:[%s1603_s2 + $0x8] sm:$0xff] (!%p544_p2)   ;;  %v1334_v4 = vld [vmem:[%s1603_s2 + $0x10] sm:$0xff] (!%p544_p2)  }
  0x10   : > { %1279 = vmatpush3.bf16.msra.mxu0 (!%p544_p2), %v1332_v1  ;;  %v1335_v5 = vld [vmem:[%s1603_s2 + $0x18] sm:$0xff] (!%p544_p2)   ;;  %1293 = vmatpush3.bf16.msra.mxu1 (!%p544_p2), %v1337_v8  ;;  %v1247_v8 = vld [vmem:[%s1588_s10] ss:$0 sm:$0xff] (!%p544_p2) }
  0x11   : > { %1280 = vmatprep.subr.bf16.mxu0 %v1356_v2  ;;  %s1608_s21 = smov (!%p605_p3, %s1225_s21), 5  ;;  %1298 = vmatprep.subr.bf16.mxu1 %v1356_v2  ;;  %v1240_v35 = vld [vmem:[%s1606_s28] ss:$0 sm:$0xff] }
  0x12   : > { %s1230_s3 = sshll.u32 %s1608_s21, 2  ;;  %s1231_s16 = sshll.u32 %s1608_s21, 3 }
  0x13   : > { %s608_s30 = scalar_lea.vmem %s1604_s0, %s1230_s3  ;;  %s1605_s3 = sld [smem:[#allocation5_spill]] }
  0x14   : > { %1281 = vmatpush3.bf16.msra.mxu0 %v1333_v3  ;;  %v622_v6 = vld [vmem:[%s608_s30] sm:$0xf]  ;;  %s612_s28 = scalar_lea.vmem %s1595_s17, %s1231_s16  ;;  %s616_s30 = scalar_lea.vmem %s1596_s18, %s1231_s16 }
  0x15   : > { %1282 = vmatprep.subr.bf16.mxu0 %v1356_v2  ;;  %s620_s22 = scalar_lea.vmem %s1597_s19, %s1231_s16 }
  0x18   : > { %1283 = vmatpush3.bf16.msra.mxu0 %v1334_v4 }
  0x19   : > { %1284 = vmatprep.subr.bf16.mxu0 %v1356_v2  ;;  %v1234_v9 = vld [vmem:[%s1605_s3] ss:$0 sm:$0xff] }
  0x1c   : > { %1285 = vmatpush3.bf16.msra.mxu0 %v1335_v5 }
  0x1d   : > { %1304 = vmatprep.subr.bf16.mxu0 %v1356_v2 }
  0x1f   : > { %1287 = vmatmul.mubr.msk.bf16.vlgmr.msra.gmra.mrb[0].mxu0 %vm662_vm1, %v622_v6  ;;  %v1246_v6 = vld [vmem:[%s1587_s9] ss:$0 sm:$0xff] }
  0x20   : > { %1306 = vmatprep.mubr.msk.bf16.mxu0 %vm1357_vm0, %v1356_v2 }
  0xf2   : > { %v700_v10 = vpop.f32.mrb[0].mxu0 }
  0xf3   : > { %v701_v11 = vadd.f32 %v1234_v9, %v700_v10  ;;  %v1288_v12 = vpop.f32.mrb[1].mxu0 }
  0xf4   : > { %v703_v13 = vpop.f32.mrb[2].mxu0 }
  0xf5   : > { %v709_v14 = vsel %vm708_vm2, %v701_v11, 0.0  ;;  %v1289_v15 = vpop.f32.mrb[3].mxu0  ;;  %v1339_v13 = vld [vmem:[%s1589_s11] sm:$0xff]  }
  0xf6   : > { %v710_v16 = vrot.slane %v709_v14, 4  ;;  %1305 = vmatpush3.bf16.msra.mxu0 %v1339_v13  ;;  %v1248_v15 = vld [vmem:[%s1586_s8] ss:$0 sm:$0xff] }
  0xf7   : > { %1316 = vmatprep.subr.bf16.mxu0 %v1356_v2 }
  0xf8   : > { %v711_v17 = vadd.f32 %v710_v16, %v709_v14  ;;  %v1340_v14 = vld [vmem:[%s1591_s13] sm:$0xff]  }
  0xfa   : > { %v712_v18 = vrot.slane %v711_v17, 2 }
  0xfc   : > { %v713_v19 = vadd.f32 %v712_v18, %v711_v17 }
  0xfe   : > { %v714_v20 = vrot.slane %v713_v19, 1 }
 0x100   : > { %v715_v21 = vadd.f32 %v714_v20, %v713_v19 }
 0x102   : > { %v717_v22 = vmul.f32 0.125, %v715_v21 }
 0x104   : > { %v718_v23 = vsub.f32 %v701_v11, %v717_v22 }
 0x106   : > { %v719_v24 = vmul.f32 %v718_v23, %v718_v23 }
 0x108   : > { %v720_v25 = vsel %vm708_vm2, %v719_v24, 0.0 }
 0x109   : > { %v721_v26 = vrot.slane %v720_v25, 4 }
 0x10b   : > { %v722_v27 = vadd.f32 %v721_v26, %v720_v25 }
 0x10d   : > { %v723_v28 = vrot.slane %v722_v27, 2 }
 0x10f   : > { %v724_v29 = vadd.f32 %v723_v28, %v722_v27 }
 0x111   : > { %v725_v30 = vrot.slane %v724_v29, 1 }
 0x113   : > { %v726_v31 = vadd.f32 %v725_v30, %v724_v29 }
 0x115   : > { %v727_v32 = vmul.f32 0.125, %v726_v31 }
 0x117   : > { %v728_v33 = vadd.f32 1e-05, %v727_v32 }
 0x119   : > { %1342 = vrsqrt.f32 %v728_v33 }
 0x123   : > { %v1343_v34 = vpop.eup %1342 }
 0x124   : > { %v730_v36 = vmul.f32 %v1343_v34, %v718_v23 }
 0x126   : > { %v737_v38 = vmul.f32 %v1240_v35, %v730_v36 }
 0x128   : > { %v744_v39 = vadd.f32 %v1241_v37, %v737_v38 }
 0x12a   : > { %v745_v40 = vmax.f32 %v744_v39, 0.0 }
 0x12c   : > { %v746_v41 = vpack.c.bf16 %v745_v40, %v745_v40 }
 0x12e   : > { %1295 = vmatmul.mubr.msk.bf16.vlgmr.msra.gmra.mrb[0].mxu1 %vm708_vm2, %v746_v41 }
 0x12f   : > { %1300 = vmatprep.mubr.msk.bf16.mxu1 %vm1357_vm0, %v1356_v2  ;;  %1299 = vmatpush3.bf16.msra.mxu1 %v1338_v42 }
 0x130   : > { %1310 = vmatprep.subr.bf16.mxu1 %v1356_v2 }
 0x201   : > { %v807_v44 = vpop.f32.mrb[0].mxu1 }
 0x202   : > { %v808_v45 = vadd.f32 %v1242_v43, %v807_v44  ;;  %v1296_v46 = vpop.f32.mrb[1].mxu1 }
 0x203   : > { %v810_v47 = vpop.f32.mrb[2].mxu1 }
 0x204   : > { %v816_v48 = vsel %vm815_vm3, %v808_v45, 0.0  ;;  %v1297_v49 = vpop.f32.mrb[3].mxu1  ;;  %v1251_v47 = vld [vmem:[%s1590_s12] ss:$0 sm:$0xff] }
 0x205   : > { %v817_v50 = vrot.slane %v816_v48, 4 }
 0x207   : > { %v818_v51 = vadd.f32 %v817_v50, %v816_v48  ;;  %v1254_v48 = vld [vmem:[%s1592_s14] ss:$0 sm:$0xff] }
 0x209   : > { %v819_v52 = vrot.slane %v818_v51, 2 }
 0x20b   : > { %v820_v53 = vadd.f32 %v819_v52, %v818_v51 }
 0x20d   : > { %v821_v54 = vrot.slane %v820_v53, 1 }
 0x20f   : > { %v822_v55 = vadd.f32 %v821_v54, %v820_v53 }
 0x211   : > { %v823_v56 = vmul.f32 0.125, %v822_v55 }
 0x213   : > { %v824_v57 = vsub.f32 %v808_v45, %v823_v56  ;;  %v1341_v45 = vld [vmem:[%s1593_s15] sm:$0xff]  }
 0x215   : > { %v825_v58 = vmul.f32 %v824_v57, %v824_v57 }
 0x217   : > { %v826_v59 = vsel %vm815_vm3, %v825_v58, 0.0  ;;  %v1257_v58 = vld [vmem:[#allocation2] ss:$0 sm:$0xff] }
 0x218   : > { %v827_v60 = vrot.slane %v826_v59, 4 }
 0x21a   : > { %v828_v61 = vadd.f32 %v827_v60, %v826_v59 }
 0x21c   : > { %v829_v62 = vrot.slane %v828_v61, 2 }
 0x21e   : > { %v830_v63 = vadd.f32 %v829_v62, %v828_v61 }
 0x220   : > { %v831_v0 = vrot.slane %v830_v63, 1 }
 0x222   : > { %v832_v1 = vadd.f32 %v831_v0, %v830_v63 }
 0x224   : > { %v833_v3 = vmul.f32 0.125, %v832_v1 }
 0x226   : > { %v834_v4 = vadd.f32 1e-05, %v833_v3 }
 0x228   : > { %1344 = vrsqrt.f32 %v834_v4 }
 0x232   : > { %v1345_v5 = vpop.eup %1344 }
 0x233   : > { %v836_v7 = vmul.f32 %v1345_v5, %v824_v57 }
 0x235   : > { %v843_v9 = vmul.f32 %v1246_v6, %v836_v7 }
 0x237   : > { %v850_v10 = vadd.f32 %v1247_v8, %v843_v9 }
 0x239   : > { %v851_v11 = vmax.f32 %v850_v10, 0.0 }
 0x23b   : > { %v852_v12 = vpack.c.bf16 %v851_v11, %v851_v11 }
 0x23d   : > { %1301 = vmatmul.mubr.msk.bf16.vlgmr.msra.gmra.mrb[4].mxu1 %vm815_vm3, %v852_v12 }
 0x23e   : > { %1312 = vmatprep.mubr.msk.bf16.mxu1 %vm1357_vm0, %v1356_v2  ;;  %1311 = vmatpush3.bf16.msra.mxu1 %v1340_v14 }
 0x310   : > { %v905_v16 = vpop.f32.mrb[4].mxu1 }
 0x311   : > { %v906_v17 = vadd.f32 %v1248_v15, %v905_v16  ;;  %v1302_v18 = vpop.f32.mrb[5].mxu1 }
 0x312   : > { %v908_v19 = vpop.f32.mrb[6].mxu1 }
 0x313   : > { %v911_v20 = vsel %vm815_vm3, %v906_v17, 0.0  ;;  %v1303_v21 = vpop.f32.mrb[7].mxu1 }
 0x314   : > { %v912_v22 = vrot.slane %v911_v20, 4 }
 0x316   : > { %v913_v23 = vadd.f32 %v912_v22, %v911_v20 }
 0x318   : > { %v914_v24 = vrot.slane %v913_v23, 2 }
 0x31a   : > { %v915_v25 = vadd.f32 %v914_v24, %v913_v23 }
 0x31c   : > { %v916_v26 = vrot.slane %v915_v25, 1 }
 0x31e   : > { %v917_v27 = vadd.f32 %v916_v26, %v915_v25 }
 0x320   : > { %v918_v28 = vmul.f32 0.125, %v917_v27 }
 0x322   : > { %v919_v29 = vsub.f32 %v906_v17, %v918_v28 }
 0x324   : > { %v920_v30 = vmul.f32 %v919_v29, %v919_v29 }
 0x326   : > { %v921_v31 = vsel %vm815_vm3, %v920_v30, 0.0 }
 0x327   : > { %v922_v32 = vrot.slane %v921_v31, 4 }
 0x329   : > { %v923_v33 = vadd.f32 %v922_v32, %v921_v31 }
 0x32b   : > { %v924_v34 = vrot.slane %v923_v33, 2 }
 0x32d   : > { %v925_v35 = vadd.f32 %v924_v34, %v923_v33 }
 0x32f   : > { %v926_v36 = vrot.slane %v925_v35, 1 }
 0x331   : > { %v927_v37 = vadd.f32 %v926_v36, %v925_v35 }
 0x333   : > { %v928_v38 = vmul.f32 0.125, %v927_v37 }
 0x335   : > { %v929_v39 = vadd.f32 1e-05, %v928_v38 }
 0x337   : > { %1346 = vrsqrt.f32 %v929_v39 }
 0x341   : > { %v1347_v40 = vpop.eup %1346 }
 0x342   : > { %v931_v41 = vmul.f32 %v1347_v40, %v919_v29 }
 0x344   : > { %v932_v42 = vmul.f32 %v1246_v6, %v931_v41 }
 0x346   : > { %v933_v43 = vadd.f32 %v1247_v8, %v932_v42 }
 0x348   : > { %v934_v44 = vmax.f32 %v933_v43, 0.0 }
 0x34a   : > { %v935_v46 = vpack.c.bf16 %v934_v44, %v934_v44 }
 0x34c   : > { %1307 = vmatmul.mubr.msk.bf16.vlgmr.msra.gmra.mrb[4].mxu0 %vm815_vm3, %v935_v46  ;;  %1313 = vmatmul.mubr.msk.bf16.vlgmr.msra.gmra.mrb[8].mxu1 %vm815_vm3, %v935_v46 }
 0x34d   : > { %1317 = vmatpush3.bf16.msra.mxu0 %v1341_v45  ;;  %1318 = vmatprep.mubr.msk.bf16.mxu0 %vm1357_vm0, %v1356_v2 }
 0x354   : > { %1319 = vmatmul.mubr.msk.bf16.vlgmr.msra.gmra.mrb[8].mxu0 %vm815_vm3, %v935_v46 }
 0x41f   : > { %v988_v49 = vpop.f32.mrb[4].mxu0  ;;  %v1045_v2 = vpop.f32.mrb[8].mxu1 }
 0x420   : > { %v989_v50 = vadd.f32 %v1251_v47, %v988_v49  ;;  %v1046_v51 = vadd.f32 %v1254_v48, %v1045_v2  ;;  %v1308_v52 = vpop.f32.mrb[5].mxu0  ;;  %v1314_v53 = vpop.f32.mrb[9].mxu1 }
 0x421   : > { %v991_v54 = vpop.f32.mrb[6].mxu0  ;;  %v1048_v55 = vpop.f32.mrb[10].mxu1 }
 0x422   : > { %995 = vst.msk [vmem:[%s612_s28] sm:$0xff] %vm994_vm4, %v989_v50  ;;  %v1309_v56 = vpop.f32.mrb[7].mxu0  ;;  %v1315_v57 = vpop.f32.mrb[11].mxu1 }
 0x423   : > { %1052 = vst.msk [vmem:[%s616_s30] sm:$0xff] %vm1051_vm5, %v1046_v51 }
 0x427   : > { %v1102_v59 = vpop.f32.mrb[8].mxu0 }
 0x428   : > { %v1103_v60 = vadd.f32 %v1257_v58, %v1102_v59  ;;  %v1320_v61 = vpop.f32.mrb[9].mxu0 }
 0x429   : > { %v1105_v62 = vpop.f32.mrb[10].mxu0 }
 0x42a   : > { %1109 = vst.msk [vmem:[%s620_s22] sm:$0xff] %vm1108_vm6, %v1103_v60  ;;  %v1321_v63 = vpop.f32.mrb[11].mxu0 }
 0x42b PF: > { %s32_s20 = sadd.s32 1, %s1354_s20  }
 0x42c   : > { %p29_p4 = scmp.ge.s32.totalorder %s32_s20, 8  }
 0x42e   :  { %31 = sbr.rel (!%p29_p4) target bundleno = 5 (0x5), region = 142 }

</bundles_post_ra>
